<compile_context>
chip_gen: v7x
topology: tpu7x:2x2x1
jax: 0.10.0
libtpu: 0.0.40
codegen_flags: <defaults>
</compile_context>

<pallas_src>
import functools
import math

import jax
import jax.numpy as jnp
from jax import lax
from jax.experimental import pallas as pl
from jax.experimental.pallas import tpu as pltpu


def _mha_kernel(x_ref, w_ref, o_ref, qkv_ref, *, num_heads, qkv_dim):
    # x_ref   : (block_b, N, E)        batch-block of inputs
    # w_ref   : (E, 3*H*D)             fused [Wq*norm | Wk | Wv], all heads
    # o_ref   : (block_b, N, H*D)      output in the module's concat-heads layout
    # qkv_ref : (block_b, N, 3*H*D)    VMEM scratch for the fused projection
    H, D = num_heads, qkv_dim
    HD = H * D
    bb, n, e = x_ref.shape
    m_rows = bb * n

    # One wide MXU matmul for Q/K/V across all heads and all rows in this batch-block
    # (norm_factor already folded into the Wq columns).
    x2 = x_ref[...].reshape(m_rows, e)                                    # (M, E)
    qkv = jnp.dot(x2, w_ref[...], preferred_element_type=jnp.float32)     # (M, 3*H*D)

    # Park the projection in VMEM scratch: per-head q/k/v then come from static
    # ref-view loads (no XLU lane relayout of a live value).
    qkv_ref[...] = qkv.reshape(bb, n, 3 * HD)

    # Small static head loop with write-through: only one head's (bb, N, N) tile is
    # needed live at a time; nothing is accumulated in a Python list.
    for h in range(H):
        q = qkv_ref[:, :, h * D:(h + 1) * D]                              # (bb, N, D), pre-scaled
        k = qkv_ref[:, :, HD + h * D:HD + (h + 1) * D]                    # (bb, N, D)
        v = qkv_ref[:, :, 2 * HD + h * D:2 * HD + (h + 1) * D]            # (bb, N, D)

        # compatibility = (norm*Q) @ K^T, batched over the batch-block dim,
        # contracting the D (last) dims -> no materialized transpose.
        s = lax.dot_general(q, k, (((2,), (2,)), ((0,), (0,))),
                            preferred_element_type=jnp.float32)           # (bb, N, N)

        # Numerically-stable softmax over the last axis (matches torch.softmax).
        m = jnp.max(s, axis=-1, keepdims=True)
        ex = jnp.exp(s - m)
        denom = jnp.sum(ex, axis=-1, keepdims=True)
        # approx=False keeps the 1e-5 agreement with the f32 reference; approx=True
        # (EUP vrcp, off the VALU path) is the right choice once tolerance allows.
        attn = ex * pl.reciprocal(denom, approx=False)                    # (bb, N, N)

        head = lax.dot_general(attn, v, (((2,), (1,)), ((0,), (0,))),
                               preferred_element_type=jnp.float32)        # (bb, N, D)

        # Direct slab store in concat-heads layout (no jnp.concatenate pass).
        o_ref[:, :, h * D:(h + 1) * D] = head.astype(o_ref.dtype)


def fuse_qkv_weights(wq, wk, wv, qkv_dim):
    """One-time weight prep (keep off the per-call hot path).

    wq, wk, wv : (H, E, D)  -- PyTorch Linear weight (H*D, E) reshaped + transposed.
    Returns (E, 3*H*D) fused matrix, column order [q_h0..q_h{H-1}, k_*, v_*], with the
    softmax scale 1/sqrt(D) folded into the Wq columns.
    """
    H, E, D = wq.shape
    norm_factor = 1.0 / math.sqrt(qkv_dim)

    def _flatten(w):  # (H, E, D) -> (E, H*D)
        return w.transpose(1, 0, 2).reshape(E, H * D)

    return jnp.concatenate(
        [_flatten(wq * norm_factor), _flatten(wk), _flatten(wv)], axis=-1)


def _pick_block_b(B, N, target_rows=256, min_steps=2):
    """Batch elements stacked per grid step.

    Aim block_b*N at the MXU M dimension (128 rows v5e, 256 rows v6e/v7x) to fill the
    systolic array and amortize per-step pipeline overhead, but keep >= min_steps grid
    steps when B allows so the batch axis can shard across both v7x TensorCores.
    Result always divides B so every block is full (no masked tail block).
    """
    bb = max(1, min(B, target_rows // max(N, 1)))
    if B >= min_steps:
        bb = min(bb, max(1, B // min_steps))
    while B % bb:
        bb -= 1
    return bb


def multi_head_attention(x, w_fused, num_heads, qkv_dim, block_b=None):
    """
    x        : (B, N, E) float32
    w_fused  : (E, 3*H*D) float32  -- from fuse_qkv_weights()
    returns    (B, N, H*D) float32 -- same semantics as MultiHeadAttention.forward(q), h=None.
    """
    B, N, E = x.shape
    H, D = num_heads, qkv_dim
    HD = H * D
    assert w_fused.shape == (E, 3 * HD)

    if block_b is None:
        block_b = _pick_block_b(B, N)
    assert B % block_b == 0
    grid = (B // block_b,)

    kernel = functools.partial(_mha_kernel, num_heads=H, qkv_dim=D)

    return pl.pallas_call(
        kernel,
        out_shape=jax.ShapeDtypeStruct((B, N, HD), jnp.float32),
        grid_spec=pltpu.PrefetchScalarGridSpec(
            num_scalar_prefetch=0,
            grid=grid,
            in_specs=[
                pl.BlockSpec((block_b, N, E), lambda b: (b, 0, 0)),
                # Index-invariant weight block: Pallas skips re-DMA across steps
                # because the block index never changes.
                pl.BlockSpec((E, 3 * HD), lambda b: (0, 0)),
            ],
            out_specs=pl.BlockSpec((block_b, N, HD), lambda b: (b, 0, 0)),
            scratch_shapes=[pltpu.VMEM((block_b, N, 3 * HD), jnp.float32)],
        ),
        compiler_params=pltpu.CompilerParams(
            dimension_semantics=("parallel",),        # batch-block axis shards across v7x TCs
            vmem_limit_bytes=32 * 1024 * 1024,        # explicit budget, fits v5e/v6e/v7x
        ),
    )(x, w_fused)


def _reference(x, wq, wk, wv, num_heads, qkv_dim):
    # Pure-JAX reference mirroring the PyTorch module (h=None, mask=None path).
    B, N, E = x.shape
    H, D = num_heads, qkv_dim
    Q = jnp.einsum("bne,hed->bhnd", x, wq)
    K = jnp.einsum("bne,hed->bhnd", x, wk)
    V = jnp.einsum("bne,hed->bhnd", x, wv)
    s = (1.0 / math.sqrt(D)) * jnp.einsum("bhqd,bhkd->bhqk", Q, K)
    attn = jax.nn.softmax(s, axis=-1)
    heads = jnp.einsum("bhqk,bhkd->bhqd", attn, V)
    return heads.transpose(0, 2, 1, 3).reshape(B, N, H * D)


if __name__ == "__main__":
    # ModelParams: embedding_dim=32, num_heads=4, qkv_dim=16
    B, N, E, H, D = 2, 8, 32, 4, 16

    key = jax.random.PRNGKey(0)
    kx, kq, kk, kv = jax.random.split(key, 4)

    x = jax.random.normal(kx, (B, N, E), dtype=jnp.float32)

    # Deterministic init mimicking nn.Linear (uniform +/- 1/sqrt(in_features)), stored as (H, E, D).
    bound = 1.0 / math.sqrt(E)
    wq = jax.random.uniform(kq, (H, E, D), jnp.float32, -bound, bound)
    wk = jax.random.uniform(kk, (H, E, D), jnp.float32, -bound, bound)
    wv = jax.random.uniform(kv, (H, E, D), jnp.float32, -bound, bound)

    # One-time weight prep (off the hot path), then the kernel call.
    w_fused = fuse_qkv_weights(wq, wk, wv, qkv_dim=D)
    w_fused = jax.block_until_ready(w_fused)

    out = multi_head_attention(x, w_fused, num_heads=H, qkv_dim=D)
    out = jax.block_until_ready(out)

    ref = _reference(x, wq, wk, wv, num_heads=H, qkv_dim=D)
    assert out.shape == (B, N, H * D)
    assert jnp.allclose(out, ref, atol=1e-5, rtol=1e-5)

    print("KERNEL_OK")
</pallas_src>

<mosaic_0001>
module attributes {stable_mosaic.version = 11 : i64} {
  func.func @_mha_kernel(%arg0: i32, %arg1: memref<1x8x32xf32, #tpu.memory_space<vmem>>, %arg2: memref<32x192xf32, #tpu.memory_space<vmem>>, %arg3: memref<1x8x64xf32, #tpu.memory_space<vmem>>, %arg4: memref<1x8x192xf32, #tpu.memory_space<vmem>>) attributes {dimension_semantics = [#tpu.dimension_semantics<parallel>], iteration_bounds = array<i64: 2>, scalar_prefetch = 0 : i64, scratch_operands = 1 : i64, tpu.core_type = #tpu.core_type<tc>, window_params = [{transform_indices = @transform_0, window_bounds = array<i64: 1, 8, 32>}, {pipeline_mode = #tpu.pipeline_mode<synchronous>, transform_indices = @transform_1, window_bounds = array<i64: 32, 192>}, {transform_indices = @transform_2, window_bounds = array<i64: 1, 8, 64>}]} {
    %c0 = arith.constant 0 : index
    %c0_0 = arith.constant 0 : index
    %c0_1 = arith.constant 0 : index
    %0 = vector.load %arg1[%c0, %c0_0, %c0_1] : memref<1x8x32xf32, #tpu.memory_space<vmem>>, vector<1x8x32xf32>
    %1 = vector.shape_cast %0 : vector<1x8x32xf32> to vector<8x32xf32>
    %c0_2 = arith.constant 0 : index
    %c0_3 = arith.constant 0 : index
    %2 = vector.load %arg2[%c0_2, %c0_3] : memref<32x192xf32, #tpu.memory_space<vmem>>, vector<32x192xf32>
    %cst = arith.constant dense<0.000000e+00> : vector<8x192xf32>
    %3 = tpu.matmul %1, %2, %cst {dimension_numbers = #tpu.dot_dimension_numbers<[1], [0], [0], [1], [0, 0, 1, 1], [], []>} : vector<8x32xf32>, vector<32x192xf32>, vector<8x192xf32> -> vector<8x192xf32>
    %4 = vector.shape_cast %3 : vector<8x192xf32> to vector<1x8x192xf32>
    %c0_4 = arith.constant 0 : index
    %c0_5 = arith.constant 0 : index
    %c0_6 = arith.constant 0 : index
    %5 = vector.load %arg4[%c0_4, %c0_5, %c0_6] : memref<1x8x192xf32, #tpu.memory_space<vmem>>, vector<1x8x192xf32>
    tpu.vector_store %arg4[%c0_4, %c0_5, %c0_6], %4 {strides = array<i32>} : memref<1x8x192xf32, #tpu.memory_space<vmem>>, vector<1x8x192xf32>,
    %c0_7 = arith.constant 0 : index
    %c0_8 = arith.constant 0 : index
    %c0_9 = arith.constant 0 : index
    %6 = vector.load %arg4[%c0_7, %c0_8, %c0_9] : memref<1x8x192xf32, #tpu.memory_space<vmem>>, vector<1x8x16xf32>
    %c0_10 = arith.constant 0 : index
    %c0_11 = arith.constant 0 : index
    %c64 = arith.constant 64 : index
    %7 = vector.load %arg4[%c0_10, %c0_11, %c64] : memref<1x8x192xf32, #tpu.memory_space<vmem>>, vector<1x8x16xf32>
    %c0_12 = arith.constant 0 : index
    %c0_13 = arith.constant 0 : index
    %c128 = arith.constant 128 : index
    %8 = vector.load %arg4[%c0_12, %c0_13, %c128] : memref<1x8x192xf32, #tpu.memory_space<vmem>>, vector<1x8x16xf32>
    %cst_14 = arith.constant dense<0.000000e+00> : vector<1x8x8xf32>
    %9 = tpu.matmul %6, %7, %cst_14 {dimension_numbers = #tpu.dot_dimension_numbers<[2], [2], [1], [1], [0, 0, 0, 1, 1, 1], [0], [0]>} : vector<1x8x16xf32>, vector<1x8x16xf32>, vector<1x8x8xf32> -> vector<1x8x8xf32>
    %cst_15 = arith.constant dense<0xFF800000> : vector<1x8xf32>
    %10 = vector.multi_reduction <maximumf>, %9, %cst_15 [2] : vector<1x8x8xf32> to vector<1x8xf32>
    %11 = vector.shape_cast %10 : vector<1x8xf32> to vector<1x8x1xf32>
    %12 = vector.broadcast %11 : vector<1x8x1xf32> to vector<1x8x8xf32>
    %13 = arith.subf %9, %12 : vector<1x8x8xf32>
    %14 = math.exp %13 : vector<1x8x8xf32>
    %cst_16 = arith.constant dense<0.000000e+00> : vector<1x8xf32>
    %15 = vector.multi_reduction <add>, %14, %cst_16 [2] : vector<1x8x8xf32> to vector<1x8xf32>
    %16 = vector.shape_cast %15 : vector<1x8xf32> to vector<1x8x1xf32>
    %17 = tpu.reciprocal %16 : vector<1x8x1xf32> -> vector<1x8x1xf32>
    %18 = vector.broadcast %17 : vector<1x8x1xf32> to vector<1x8x8xf32>
    %19 = arith.mulf %14, %18 : vector<1x8x8xf32>
    %cst_17 = arith.constant dense<0.000000e+00> : vector<1x8x16xf32>
    %20 = tpu.matmul %19, %8, %cst_17 {dimension_numbers = #tpu.dot_dimension_numbers<[2], [1], [1], [2], [0, 0, 0, 1, 1, 2], [0], [0]>} : vector<1x8x8xf32>, vector<1x8x16xf32>, vector<1x8x16xf32> -> vector<1x8x16xf32>
    %c0_18 = arith.constant 0 : index
    %c0_19 = arith.constant 0 : index
    %c0_20 = arith.constant 0 : index
    %21 = vector.load %arg3[%c0_18, %c0_19, %c0_20] : memref<1x8x64xf32, #tpu.memory_space<vmem>>, vector<1x8x16xf32>
    tpu.vector_store %arg3[%c0_18, %c0_19, %c0_20], %20 {strides = array<i32>} : memref<1x8x64xf32, #tpu.memory_space<vmem>>, vector<1x8x16xf32>,
    %c0_21 = arith.constant 0 : index
    %c0_22 = arith.constant 0 : index
    %c16 = arith.constant 16 : index
    %22 = vector.load %arg4[%c0_21, %c0_22, %c16] : memref<1x8x192xf32, #tpu.memory_space<vmem>>, vector<1x8x16xf32>
    %c0_23 = arith.constant 0 : index
    %c0_24 = arith.constant 0 : index
    %c80 = arith.constant 80 : index
    %23 = vector.load %arg4[%c0_23, %c0_24, %c80] : memref<1x8x192xf32, #tpu.memory_space<vmem>>, vector<1x8x16xf32>
    %c0_25 = arith.constant 0 : index
    %c0_26 = arith.constant 0 : index
    %c144 = arith.constant 144 : index
    %24 = vector.load %arg4[%c0_25, %c0_26, %c144] : memref<1x8x192xf32, #tpu.memory_space<vmem>>, vector<1x8x16xf32>
    %cst_27 = arith.constant dense<0.000000e+00> : vector<1x8x8xf32>
    %25 = tpu.matmul %22, %23, %cst_27 {dimension_numbers = #tpu.dot_dimension_numbers<[2], [2], [1], [1], [0, 0, 0, 1, 1, 1], [0], [0]>} : vector<1x8x16xf32>, vector<1x8x16xf32>, vector<1x8x8xf32> -> vector<1x8x8xf32>
    %cst_28 = arith.constant dense<0xFF800000> : vector<1x8xf32>
    %26 = vector.multi_reduction <maximumf>, %25, %cst_28 [2] : vector<1x8x8xf32> to vector<1x8xf32>
    %27 = vector.shape_cast %26 : vector<1x8xf32> to vector<1x8x1xf32>
    %28 = vector.broadcast %27 : vector<1x8x1xf32> to vector<1x8x8xf32>
    %29 = arith.subf %25, %28 : vector<1x8x8xf32>
    %30 = math.exp %29 : vector<1x8x8xf32>
    %cst_29 = arith.constant dense<0.000000e+00> : vector<1x8xf32>
    %31 = vector.multi_reduction <add>, %30, %cst_29 [2] : vector<1x8x8xf32> to vector<1x8xf32>
    %32 = vector.shape_cast %31 : vector<1x8xf32> to vector<1x8x1xf32>
    %33 = tpu.reciprocal %32 : vector<1x8x1xf32> -> vector<1x8x1xf32>
    %34 = vector.broadcast %33 : vector<1x8x1xf32> to vector<1x8x8xf32>
    %35 = arith.mulf %30, %34 : vector<1x8x8xf32>
    %cst_30 = arith.constant dense<0.000000e+00> : vector<1x8x16xf32>
    %36 = tpu.matmul %35, %24, %cst_30 {dimension_numbers = #tpu.dot_dimension_numbers<[2], [1], [1], [2], [0, 0, 0, 1, 1, 2], [0], [0]>} : vector<1x8x8xf32>, vector<1x8x16xf32>, vector<1x8x16xf32> -> vector<1x8x16xf32>
    %c0_31 = arith.constant 0 : index
    %c0_32 = arith.constant 0 : index
    %c16_33 = arith.constant 16 : index
    %37 = vector.load %arg3[%c0_31, %c0_32, %c16_33] : memref<1x8x64xf32, #tpu.memory_space<vmem>>, vector<1x8x16xf32>
    tpu.vector_store %arg3[%c0_31, %c0_32, %c16_33], %36 {strides = array<i32>} : memref<1x8x64xf32, #tpu.memory_space<vmem>>, vector<1x8x16xf32>,
    %c0_34 = arith.constant 0 : index
    %c0_35 = arith.constant 0 : index
    %c32 = arith.constant 32 : index
    %38 = vector.load %arg4[%c0_34, %c0_35, %c32] : memref<1x8x192xf32, #tpu.memory_space<vmem>>, vector<1x8x16xf32>
    %c0_36 = arith.constant 0 : index
    %c0_37 = arith.constant 0 : index
    %c96 = arith.constant 96 : index
    %39 = vector.load %arg4[%c0_36, %c0_37, %c96] : memref<1x8x192xf32, #tpu.memory_space<vmem>>, vector<1x8x16xf32>
    %c0_38 = arith.constant 0 : index
    %c0_39 = arith.constant 0 : index
    %c160 = arith.constant 160 : index
    %40 = vector.load %arg4[%c0_38, %c0_39, %c160] : memref<1x8x192xf32, #tpu.memory_space<vmem>>, vector<1x8x16xf32>
    %cst_40 = arith.constant dense<0.000000e+00> : vector<1x8x8xf32>
    %41 = tpu.matmul %38, %39, %cst_40 {dimension_numbers = #tpu.dot_dimension_numbers<[2], [2], [1], [1], [0, 0, 0, 1, 1, 1], [0], [0]>} : vector<1x8x16xf32>, vector<1x8x16xf32>, vector<1x8x8xf32> -> vector<1x8x8xf32>
    %cst_41 = arith.constant dense<0xFF800000> : vector<1x8xf32>
    %42 = vector.multi_reduction <maximumf>, %41, %cst_41 [2] : vector<1x8x8xf32> to vector<1x8xf32>
    %43 = vector.shape_cast %42 : vector<1x8xf32> to vector<1x8x1xf32>
    %44 = vector.broadcast %43 : vector<1x8x1xf32> to vector<1x8x8xf32>
    %45 = arith.subf %41, %44 : vector<1x8x8xf32>
    %46 = math.exp %45 : vector<1x8x8xf32>
    %cst_42 = arith.constant dense<0.000000e+00> : vector<1x8xf32>
    %47 = vector.multi_reduction <add>, %46, %cst_42 [2] : vector<1x8x8xf32> to vector<1x8xf32>
    %48 = vector.shape_cast %47 : vector<1x8xf32> to vector<1x8x1xf32>
    %49 = tpu.reciprocal %48 : vector<1x8x1xf32> -> vector<1x8x1xf32>
    %50 = vector.broadcast %49 : vector<1x8x1xf32> to vector<1x8x8xf32>
    %51 = arith.mulf %46, %50 : vector<1x8x8xf32>
    %cst_43 = arith.constant dense<0.000000e+00> : vector<1x8x16xf32>
    %52 = tpu.matmul %51, %40, %cst_43 {dimension_numbers = #tpu.dot_dimension_numbers<[2], [1], [1], [2], [0, 0, 0, 1, 1, 2], [0], [0]>} : vector<1x8x8xf32>, vector<1x8x16xf32>, vector<1x8x16xf32> -> vector<1x8x16xf32>
    %c0_44 = arith.constant 0 : index
    %c0_45 = arith.constant 0 : index
    %c32_46 = arith.constant 32 : index
    %53 = vector.load %arg3[%c0_44, %c0_45, %c32_46] : memref<1x8x64xf32, #tpu.memory_space<vmem>>, vector<1x8x16xf32>
    tpu.vector_store %arg3[%c0_44, %c0_45, %c32_46], %52 {strides = array<i32>} : memref<1x8x64xf32, #tpu.memory_space<vmem>>, vector<1x8x16xf32>,
    %c0_47 = arith.constant 0 : index
    %c0_48 = arith.constant 0 : index
    %c48 = arith.constant 48 : index
    %54 = vector.load %arg4[%c0_47, %c0_48, %c48] : memref<1x8x192xf32, #tpu.memory_space<vmem>>, vector<1x8x16xf32>
    %c0_49 = arith.constant 0 : index
    %c0_50 = arith.constant 0 : index
    %c112 = arith.constant 112 : index
    %55 = vector.load %arg4[%c0_49, %c0_50, %c112] : memref<1x8x192xf32, #tpu.memory_space<vmem>>, vector<1x8x16xf32>
    %c0_51 = arith.constant 0 : index
    %c0_52 = arith.constant 0 : index
    %c176 = arith.constant 176 : index
    %56 = vector.load %arg4[%c0_51, %c0_52, %c176] : memref<1x8x192xf32, #tpu.memory_space<vmem>>, vector<1x8x16xf32>
    %cst_53 = arith.constant dense<0.000000e+00> : vector<1x8x8xf32>
    %57 = tpu.matmul %54, %55, %cst_53 {dimension_numbers = #tpu.dot_dimension_numbers<[2], [2], [1], [1], [0, 0, 0, 1, 1, 1], [0], [0]>} : vector<1x8x16xf32>, vector<1x8x16xf32>, vector<1x8x8xf32> -> vector<1x8x8xf32>
    %cst_54 = arith.constant dense<0xFF800000> : vector<1x8xf32>
    %58 = vector.multi_reduction <maximumf>, %57, %cst_54 [2] : vector<1x8x8xf32> to vector<1x8xf32>
    %59 = vector.shape_cast %58 : vector<1x8xf32> to vector<1x8x1xf32>
    %60 = vector.broadcast %59 : vector<1x8x1xf32> to vector<1x8x8xf32>
    %61 = arith.subf %57, %60 : vector<1x8x8xf32>
    %62 = math.exp %61 : vector<1x8x8xf32>
    %cst_55 = arith.constant dense<0.000000e+00> : vector<1x8xf32>
    %63 = vector.multi_reduction <add>, %62, %cst_55 [2] : vector<1x8x8xf32> to vector<1x8xf32>
    %64 = vector.shape_cast %63 : vector<1x8xf32> to vector<1x8x1xf32>
    %65 = tpu.reciprocal %64 : vector<1x8x1xf32> -> vector<1x8x1xf32>
    %66 = vector.broadcast %65 : vector<1x8x1xf32> to vector<1x8x8xf32>
    %67 = arith.mulf %62, %66 : vector<1x8x8xf32>
    %cst_56 = arith.constant dense<0.000000e+00> : vector<1x8x16xf32>
    %68 = tpu.matmul %67, %56, %cst_56 {dimension_numbers = #tpu.dot_dimension_numbers<[2], [1], [1], [2], [0, 0, 0, 1, 1, 2], [0], [0]>} : vector<1x8x8xf32>, vector<1x8x16xf32>, vector<1x8x16xf32> -> vector<1x8x16xf32>
    %c0_57 = arith.constant 0 : index
    %c0_58 = arith.constant 0 : index
    %c48_59 = arith.constant 48 : index
    %69 = vector.load %arg3[%c0_57, %c0_58, %c48_59] : memref<1x8x64xf32, #tpu.memory_space<vmem>>, vector<1x8x16xf32>
    tpu.vector_store %arg3[%c0_57, %c0_58, %c48_59], %68 {strides = array<i32>} : memref<1x8x64xf32, #tpu.memory_space<vmem>>, vector<1x8x16xf32>,
    return
  }
  func.func @transform_0(%arg0: i32) -> (i32, i32, i32) {
    %c0_i32 = arith.constant 0 : i32
    %c0_i32_0 = arith.constant 0 : i32
    %c0_i32_1 = arith.constant 0 : i32
    return %arg0, %c0_i32, %c0_i32_0 : i32, i32, i32
  }
  func.func @transform_1(%arg0: i32) -> (i32, i32) {
    %c0_i32 = arith.constant 0 : i32
    %c0_i32_0 = arith.constant 0 : i32
    %c0_i32_1 = arith.constant 0 : i32
    return %c0_i32, %c0_i32_0 : i32, i32
  }
  func.func @transform_2(%arg0: i32) -> (i32, i32, i32) {
    %c0_i32 = arith.constant 0 : i32
    %c0_i32_0 = arith.constant 0 : i32
    %c0_i32_1 = arith.constant 0 : i32
    return %arg0, %c0_i32, %c0_i32_0 : i32, i32, i32
  }
}

</mosaic_0001>

<bundles_post_ra>
// kernel: tpu_custom_call.1
= control target key start
LH: loop header
LB: loop body
LE: loop exit
PB: predicated region body
PF: predicated region fallthrough
CT: control target
= control target key end

     0   :  { %7 = vsyncpa [#allocation4], 0  ;;  %s1644_s0 = inlined_call_operand.hbm [shape: f32[2,8,32], index: 0, kind: input, shape index: {}]   ;;  %s1645_s1 = inlined_call_operand.hbm [shape: f32[32,192], index: 1, kind: input, shape index: {}]   ;;  %s1646_s2 = inlined_call_operand.hbm [shape: f32[2,8,64], index: 2, kind: output, shape index: {}]  }
   0x1   :  { %9 = vsyncpa [#allocation4 + $0x1], 0 }
   0x2   :  { %10 = vsyncpa [#allocation7], 0 }
   0x3   :  { %11 = vsyncpa [#allocation5], 0 }
   0x4   :  { %13 = vsyncpa [#allocation5 + $0x1], 0  ;;  %s1380_s9 = smov 0   ;;  %s1382_s10 = smov 0  }
   0x5   :  { %s1384_s11 = smov 0   ;;  %s1386_s12 = smov 0  }
   0x6 LB: > { %s1401_s13 = sadd.s32 4294967295, %s1349_s12   ;;  %s1046_s14 = sadd.s32 4294967294, %s1349_s12   ;;  %s1349_s12 = sphi %s1386_s12, %s1666_s12   ;;  %s1345_s11 = sphi %s1384_s11, %s1665_s11   ;;  %s1341_s10 = sphi %s1382_s10, %s1664_s10   ;;  %s1337_s9 = sphi %s1380_s9, %s1663_s9  }
   0x7   : > { %p39_p0 = scmp.ne.s32.totalorder %s1341_s10, %s1337_s9  ;;  %p1647_p1 = scmp.eq.s32.totalorder %s1401_s13, 0 }
   0x8   : > { %p90_p3 = scmp.eq.s32.totalorder %s1046_s14, 1  ;;  %p1047_p5 = scmp.ge.s32.totalorder %s1349_s12, 1 }
   0x9   : > { %p1410_p4 = por %p1647_p1, %p39_p0  ;;  %p97_p7 = scmp.lt.s32.totalorder %s1349_s12, 3 }
   0xa   : > { %p1415_p6 = por %p90_p3, %p39_p0  ;;  %s1351_s18 = smov [#allocation6]  }
   0xb   : > { %s1650_s15 = scalar_select %p1410_p4, 1, 0 }
   0xc   : > { %s1651_s16 = scalar_select %p1415_p6, 1, 0 }
   0xd   : > { %p1420_p8 = pnand %p1047_p5, %p97_p7  ;;  %s109_s19 = sshll.u32 %s1351_s18, 4  ;;  %s1424_s19 = int_to_ptr.vmem [resolvable:$true] %s109_s19 }
   0xe   : > { %s1436_s21 = sadd.s32 1, %s1349_s12   ;;  %s26_s22 = sadd.s32 1, %s1345_s11 }
   0xf   : > { %s1652_s17 = scalar_select %p1420_p8, 1, 0 }
  0x10   : > { %p1145_p9 = pneg %p1420_p8  ;;  %s23_s23 = ssub.s32 %s1349_s12, %s1436_s21 }
  0x11   : > { %s1221_s26 = scalar_lea.hbm %s1645_s1, 1024 }
  0x12   : > { %p1431_p11 = pnand %p1145_p9, %p1647_p1  ;;  %p1222_p12 = scmp.ne.s32.totalorder %s1645_s1, %s1221_s26 }
  0x13   : > { %p1228_p5 = scmp.lt.u32.totalorder %s1221_s26, %s1645_s1 }
  0x14   : > { %p1223_p13 = pneg %p1431_p11 }
  0x16   : > { %p1224_p0 = pnand %p1223_p13, %p1222_p12 }
  0x18   : > { %p1225_p3 = pneg %p1224_p0 }
  0x1a   : > { %p1230_p7 = pnand %p1228_p5, %p1225_p3 }
  0x1c   : > { %1233 = shalt.err (!%p1230_p7)
}
  0x1d   : > { %s1234_s3 = scalar_lea.vmem %s1424_s19, 1024  ;;  %p1242_p2 = scmp.lt.s32.totalorder %s1424_s19, %s1424_s19 }
  0x1e   : > { %p1235_p9 = scmp.ne.s32.totalorder %s1424_s19, %s1234_s3  ;;  %p1243_p6 = scmp.lt.s32.totalorder %s1234_s3, %s1234_s3 }
  0x20   : > { %p1237_p10 = pnand %p1235_p9, %p1223_p13  ;;  %p1244_p4 = por %p1243_p6, %p1242_p2 }
  0x22   : > { %p1238_p1 = pneg %p1237_p10 }
  0x24   : > { %p1245_p8 = pnand %p1244_p4, %p1238_p1 }
  0x26   : > { %1248 = shalt.err (!%p1245_p8)
}
  0x27   : > { %s1352_s4 = smov 256   ;;  %s1353_s5 = smov 16  }
  0x28   : > { %1148 = dma.hbm_to_vmem [thread:$0]  (!%p1431_p11), %s1645_s1, 1024, %s1424_s19, [#allocation7], %s1352_s4, %s1352_s4, %s1353_s5  }
  0x29   : > { %p24_p2 = scmp.eq.s32.totalorder %s23_s23, 0  ;;  %p33_p1 = scmp.ne.s32.totalorder %s1345_s11, %s1341_s10 }
  0x2a   : > { %p34_p4 = scmp.eq.s32.totalorder %s1349_s12, 0  ;;  %p1158_p6 = scmp.lt.s32.totalorder %s1349_s12, 2 }
  0x2b   : > { %s1467_s8 = scalar_select %p24_p2, %s1345_s11, %s26_s22  }
  0x2c   : > { %p35_p8 = por %p34_p4, %p33_p1  ;;  %p1654_p10 = scmp.eq.s32.totalorder %s1401_s13, 1 }
  0x2d   : > { %s123_s18 = sand.u32 1, %s1345_s11   ;;  %s1051_s24 = sshll.u32 %s1349_s12, 7 }
  0x2e   : > { %p1471_p12 = por %p1654_p10, %p33_p1  ;;  %s1050_s25 = sshll.u32 %s123_s18, 3 }
  0x2f   : > { %s1480_s27 = scalar_lea.hbm %s1644_s0, %s1051_s24  ;;  %s127_s19 = scalar_lea.vmem [#allocation3], %s1050_s25 }
  0x30   : > { %s134_s22 = sshll.u32 %s127_s19, 4  ;;  %p1482_p11 = pnand %p1158_p6, %p35_p8  ;;  %s1486_s22 = int_to_ptr.vmem [resolvable:$true] %s134_s22 }
  0x31   : > { %s124_s28 = scalar_lea.sflag [#allocation4], %s123_s18  ;;  %s1249_s29 = scalar_lea.hbm %s1480_s27, 128 }
  0x32   : > { %p1250_p13 = scmp.ne.s32.totalorder %s1480_s27, %s1249_s29  ;;  %p1251_p0 = pneg %p1482_p11 }
  0x33   : > { %s1254_s4 = scalar_lea.hbm %s1644_s0, 256  ;;  %p1255_p7 = scmp.lt.u32.totalorder %s1480_s27, %s1644_s0 }
  0x34   : > { %p1252_p3 = pnand %p1251_p0, %p1250_p13  ;;  %p1256_p9 = scmp.lt.u32.totalorder %s1254_s4, %s1249_s29 }
  0x35   : > { %p1258_p1 = scmp.lt.u32.totalorder %s1249_s29, %s1480_s27 }
  0x36   : > { %p1253_p5 = pneg %p1252_p3  ;;  %p1257_p2 = por %p1256_p9, %p1255_p7 }
  0x38   : > { %p1259_p4 = por %p1258_p1, %p1257_p2 }
  0x3a   : > { %p1260_p6 = pnand %p1259_p4, %p1253_p5 }
  0x3c   : > { %1263 = shalt.err (!%p1260_p6)
}
  0x3d   : > { %s1264_s7 = scalar_lea.vmem %s1486_s22, 128  ;;  %s1354_s18 = smov [#allocation3]  }
  0x3e   : > { %p1265_p8 = scmp.ne.s32.totalorder %s1486_s22, %s1264_s7  ;;  %s1269_s24 = sshll.u32 %s1354_s18, 4  ;;  %s1270_s24 = int_to_ptr.vmem [resolvable:$false] %s1269_s24 }
  0x3f   : > { %s1271_s25 = scalar_lea.vmem %s1270_s24, 256  ;;  %p1272_p3 = scmp.lt.s32.totalorder %s1486_s22, %s1270_s24 }
  0x40   : > { %p1267_p10 = pnand %p1265_p8, %p1251_p0  ;;  %p1273_p7 = scmp.lt.s32.totalorder %s1271_s25, %s1264_s7 }
  0x42   : > { %p1268_p13 = pneg %p1267_p10  ;;  %p1274_p9 = por %p1273_p7, %p1272_p3 }
  0x44   : > { %p1275_p2 = pnand %p1274_p9, %p1268_p13 }
  0x46   : > { %1278 = shalt.err (!%p1275_p2)
}
  0x47   : > { %1152 = dma.hbm_to_vmem [thread:$0]  (!%p1482_p11), %s1480_s27, 128, %s1486_s22, %s124_s28  }
  0x48   : > { %p1657_p5 = scmp.ne.s32.totalorder %s1652_s17, 0 }
  0x49   : > { %s1516_s20 = sand.u32 (!%p1657_p5), 1, %s1341_s10   ;;  %p1658_p0 = scmp.ne.s32.totalorder (!%p1657_p5), %s1650_s15, 0 }
  0x4a   : > { %143 = sbr.rel (%p1657_p5) target bundleno = 1350 (0x546), region = 28  ;;  %s1053_s26 = sshll.u32 (!%p1657_p5), %s1516_s20, 3 }
  0x4b   : > { %s146_s19 = scalar_lea.sflag (!%p1657_p5), [#allocation4], %s1516_s20  ;;  %s149_s29 = scalar_lea.vmem (!%p1657_p5), [#allocation3], %s1053_s26 }
  0x51   : > { %1324 = dma.done.wait (%p1658_p0), %s146_s19, 128  }
  0x52   : > { %1326 = vsyncadd (%p1658_p0), %s146_s19, 4294967168  ;;  %p1659_p11 = scmp.eq.s32.totalorder %s1401_s13, 0 }
  0x54   : > { %1328 = dma.done.wait (%p1659_p11), [#allocation7], 1024   ;;  %p1660_p1 = pmov %p1659_p11 }
  0x55   : > { %v1355_v0 = vmov 0.0   ;;  %v176_v1 = vld [vmem:[#allocation6 + $0x8] sm:$0xff]  ;;  %v178_v2 = vld [vmem:[#allocation6 + $0x18] sm:$0xff]  ;;  %v175_v3 = vld [vmem:[#allocation6] sm:$0xff]  ;;  %vm183_vm0 = vcmask 261120   ;;  %vm1356_vm1 = vmmov 0  }
  0x56   : > { %1330 = vsyncadd (%p1660_p1), [#allocation7], 4294966272  ;;  %251 = vmatprep.mubr.f32.mxu0 %v1355_v0  ;;  %1089 = vmatprep.subr.mxu1 %v1355_v0  ;;  %v1129_v4 = vpack.c.bf16 %v178_v2, %v176_v1  ;;  %v177_v5 = vld [vmem:[#allocation6 + $0x10] sm:$0xff]  ;;  %v180_v6 = vld [vmem:[#allocation6 + $0x28] sm:$0xff]  ;;  %vm259_vm2 = vcmask 523264   ;;  %s1357_s15 = smov 112  }
  0x57   : > { %v182_v7 = vld [vmem:[#allocation6 + $0x38] sm:$0xff]  ;;  %v1131_v8 = vpack.c.bf16 %v177_v5, %v175_v3  ;;  %v179_v10 = vld [vmem:[#allocation6 + $0x20] sm:$0xff]  ;;  %v181_v11 = vld [vmem:[#allocation6 + $0x30] sm:$0xff]  ;;  %1091 = vmatprep.mubr.msk.f32.mxu1 %vm1356_vm1, %v1355_v0  ;;  %s1358_s17 = smov 64   ;;  %s1359_s27 = smov 32   ;;  %vm266_vm3 = vcmask 130048  }
  0x58   : > { %v1133_v9 = vpack.c.bf16 %v182_v7, %v180_v6  ;;  %1130 = vmatprep.subr.bf16.mxu0 %v1129_v4  ;;  %v1135_v12 = vpack.c.bf16 %v181_v11, %v179_v10  ;;  %v174_v13 = vld [vmem:[%s149_s29] sm:$0xff]  ;;  %s1360_s22 = smov 48   ;;  %s1361_s23 = smov 16   ;;  %vm341_vm4 = vcmask 64512   ;;  %vm600_vm5 = vcmask 261248  }
  0x59   : > { %1132 = vmatpush1.bf16.msra.mxu0 %v1131_v8  ;;  %s1362_s28 = smov 96   ;;  %s1363_s30 = smov 80   ;;  %vm775_vm6 = vcmask 392448   ;;  %vm950_vm7 = vcmask 523648  }
  0x5a   : > { %1134 = vmatprep.subr.bf16.mxu0 %v1133_v9  ;;  %s173_s3 = scalar_lea.vmem [#allocation8], %s1053_s26  ;;  %s1070_s4 = sshll.u32 %s1401_s13, 7 }
  0x5b   : > { %s966_s5 = sshll.u32 %s173_s3, 4  ;;  %s1600_s18 = scalar_lea.hbm %s1646_s2, %s1070_s4  ;;  %s1602_s5 = int_to_ptr.vmem [resolvable:$true] %s966_s5 }
  0x5c   : > { %s953_s24 = scalar_lea.sflag [#allocation5], %s1516_s20  ;;  %s1279_s25 = scalar_lea.vmem %s1602_s5, 128 }
  0x5d   : > { %1136 = vmatpush1.bf16.msra.mxu0 %v1135_v12  ;;  %p1280_p4 = scmp.ne.s32.totalorder %s1602_s5, %s1279_s25  ;;  %s1364_s13 = smov [#allocation8]  }
  0x5e   : > { %1099 = vmatprep.subr.mxu0 %v1355_v0  ;;  %s1283_s26 = sshll.u32 %s1364_s13, 4  ;;  %s1284_s26 = int_to_ptr.vmem [resolvable:$false] %s1283_s26 }
  0x5f   : > { %p1281_p6 = pnand %p1280_p4, %p1471_p12  ;;  %s1285_s19 = scalar_lea.vmem %s1284_s26, 256 }
  0x60   : > { %1056 = vmatmul.mubr.msk.f32.vlgmr.msra.gmra.mrb[0].mxu0 %vm183_vm0, %v174_v13  ;;  %p1286_p10 = scmp.lt.s32.totalorder %s1602_s5, %s1284_s26  ;;  %p1287_p13 = scmp.lt.s32.totalorder %s1285_s19, %s1279_s25 }
  0x61   : > { %1101 = vmatprep.mubr.msk.f32.mxu0 %vm1356_vm1, %v1355_v0  ;;  %p1282_p8 = pneg %p1281_p6 }
  0x62   : > { %p1288_p3 = por %p1287_p13, %p1286_p10 }
  0x64   : > { %p1289_p7 = pnand %p1288_p3, %p1282_p8 }
 0x133   : > { %v253_v14 = vpop.f32.mrb[0].mxu0 }
 0x134   : > { %v255_v15 = vpop.f32.mrb[1].mxu0  ;;  %430 = vrot.lane.b32.xlu1 %v253_v14, %s1357_s15  ;;  %264 = vrot.lane.b32.xlu0 %v253_v14, %s1358_s17 }
 0x135   : > { %260 = vst.msk [vmem:[#allocation2 + $0x8] sm:$0xff] %vm259_vm2, %v255_v15 }
 0x138   : > { %607 = vrot.lane.b32.xlu1 %v253_v14, %s1359_s27  ;;  %432 = vrot.lane.b32.xlu0 %v253_v14, %s1360_s22 }
 0x13c   : > { %782 = vrot.lane.b32.xlu1 %v253_v14, %s1361_s23  ;;  %605 = vrot.lane.b32.xlu0 %v253_v14, %s1362_s28  ;;  %v1546_v19 = vld [vmem:[#allocation2 + $0x8] sm:$0xff] }
 0x140   : > { %780 = vrot.lane.b32.xlu0 %v253_v14, %s1363_s30 }
 0x1a6   : > { %v431_v16 = vpop.permute.xlu1 %430  ;;  %v265_v17 = vpop.permute.xlu0 %264 }
 0x1a7   : > { %1090 = vmatpush3.xpose.msk.msra.mxu1 %vm266_vm3, %v265_v17 }
 0x1a8   : > { %1094 = vmatprep.subr.mxu1 %v1355_v0 }
 0x1aa   : > { %1092 = vmatmul.mubr.msk.f32.vlgmr.msra.gmra.mrb[0].mxu1 %vm266_vm3, %v253_v14  ;;  %v433_v18 = vpop.permute.xlu0 %432  ;;  %v608_v20 = vpop.permute.xlu1 %607 }
 0x1ab   : > { %1095 = vmatpush3.msra.mxu1 %v1546_v19  ;;  %1100 = vmatpush3.xpose.msk.msra.mxu0 %vm266_vm3, %v433_v18 }
 0x1ac   : > { %1109 = vmatprep.subr.mxu0 %v1355_v0  ;;  %1096 = vmatprep.mubr.msk.f32.mxu1 %vm1356_vm1, %v1355_v0 }
 0x1ad   : > { %1104 = vmatprep.subr.mxu1 %v1355_v0 }
 0x1ae   : > { %1102 = vmatmul.mubr.msk.f32.vlgmr.msra.gmra.mrb[2].mxu0 %vm266_vm3, %v431_v16  ;;  %v606_v21 = vpop.permute.xlu0 %605  ;;  %v783_v22 = vpop.permute.xlu1 %782 }
 0x1af   : > { %1110 = vmatpush3.xpose.msk.msra.mxu0 %vm266_vm3, %v608_v20  ;;  %1111 = vmatprep.mubr.msk.f32.mxu0 %vm1356_vm1, %v1355_v0 }
 0x1b0   : > { %1119 = vmatprep.subr.mxu0 %v1355_v0 }
 0x1b2   : > { %1112 = vmatmul.mubr.msk.f32.vlgmr.msra.gmra.mrb[4].mxu0 %vm266_vm3, %v606_v21  ;;  %v781_v23 = vpop.permute.xlu0 %780 }
 0x1b3   : > { %1120 = vmatpush3.xpose.msk.msra.mxu0 %vm266_vm3, %v783_v22  ;;  %1121 = vmatprep.mubr.msk.f32.mxu0 %vm1356_vm1, %v1355_v0 }
 0x1b6   : > { %1122 = vmatmul.mubr.msk.f32.vlgmr.msra.gmra.mrb[6].mxu0 %vm266_vm3, %v781_v23 }
 0x27d   : > { %v337_v24 = vpop.f32.mrb[0].mxu1 }
 0x27e   : > { %v1093_v25 = vpop.f32.mrb[1].mxu1  ;;  %v342_v26 = vsel %vm341_vm4, %v337_v24, -inf }
 0x27f   : > { %343 = vmax.xlane.f32.xlu1 %v342_v26 }
 0x281   : > { %v504_v27 = vpop.f32.mrb[2].mxu0 }
 0x282   : > { %v1103_v28 = vpop.f32.mrb[3].mxu0  ;;  %v508_v29 = vsel %vm341_vm4, %v504_v27, -inf }
 0x283   : > { %509 = vmax.xlane.f32.xlu0 %v508_v29 }
 0x285   : > { %v679_v30 = vpop.f32.mrb[4].mxu0 }
 0x286   : > { %v1113_v31 = vpop.f32.mrb[5].mxu0  ;;  %v683_v32 = vsel %vm341_vm4, %v679_v30, -inf }
 0x287   : > { %684 = vmax.xlane.f32.xlu0 %v683_v32 }
 0x289   : > { %v854_v33 = vpop.f32.mrb[6].mxu0 }
 0x28a   : > { %v1123_v34 = vpop.f32.mrb[7].mxu0  ;;  %v858_v35 = vsel %vm341_vm4, %v854_v33, -inf }
 0x28b   : > { %859 = vmax.xlane.f32.xlu1 %v858_v35 }
 0x30c   : > { %v344_v36 = vpop.xlane.xlu1 %343 }
 0x30d   : > { %v345_v37 = vsub.f32 %v337_v24, %v344_v36 }
 0x30f   : > { %v346_v38 = vmul.f32 1.442695, %v345_v37 }
 0x310   : > { %v510_v39 = vpop.xlane.xlu0 %509 }
 0x311   : > { %1205 = vpow2.f32 %v346_v38  ;;  %v511_v40 = vsub.f32 %v504_v27, %v510_v39 }
 0x313   : > { %v512_v41 = vmul.f32 1.442695, %v511_v40 }
 0x314   : > { %v685_v42 = vpop.xlane.xlu0 %684 }
 0x315   : > { %1207 = vpow2.f32 %v512_v41  ;;  %v686_v43 = vsub.f32 %v679_v30, %v685_v42 }
 0x317   : > { %v687_v44 = vmul.f32 1.442695, %v686_v43 }
 0x318   : > { %v860_v51 = vpop.xlane.xlu1 %859 }
 0x319   : > { %1209 = vpow2.f32 %v687_v44  ;;  %v861_v52 = vsub.f32 %v854_v33, %v860_v51 }
 0x31b   : > { %v1206_v45 = vpop.eup %1205  ;;  %v862_v53 = vmul.f32 1.442695, %v861_v52 }
 0x31c   : > { %v348_v46 = vsel %vm341_vm4, %v1206_v45, 0.0 }
 0x31d   : > { %349 = vadd.xlane.f32.xlu0 %v348_v46  ;;  %1211 = vpow2.f32 %v862_v53 }
 0x31f   : > { %v1208_v47 = vpop.eup %1207 }
 0x320   : > { %v514_v48 = vsel %vm341_vm4, %v1208_v47, 0.0 }
 0x321   : > { %515 = vadd.xlane.f32.xlu1 %v514_v48 }
 0x323   : > { %v1210_v49 = vpop.eup %1209 }
 0x324   : > { %v689_v50 = vsel %vm341_vm4, %v1210_v49, 0.0 }
 0x325   : > { %690 = vadd.xlane.f32.xlu0 %v689_v50 }
 0x327   : > { %v1212_v54 = vpop.eup %1211 }
 0x328   : > { %v864_v55 = vsel %vm341_vm4, %v1212_v54, 0.0 }
 0x332   : > { %695 = vrot.lane.b32.xlu1 %v1546_v19, %s1362_s28 }
 0x33b   : > { %520 = vrot.lane.b32.xlu0 %v1546_v19, %s1357_s15 }
 0x356   : > { %865 = vadd.xlane.f32.xlu1 %v864_v55 }
 0x367   : > { %870 = vrot.lane.b32.xlu1 %v1546_v19, %s1363_s30 }
 0x3aa   : > { %v350_v56 = vpop.xlane.xlu0 %349 }
 0x3ab   : > { %1213 = vrcp.f32 %v350_v56 }
 0x3ae   : > { %v516_v57 = vpop.xlane.xlu1 %515 }
 0x3af   : > { %1215 = vrcp.f32 %v516_v57 }
 0x3b2   : > { %v691_v58 = vpop.xlane.xlu0 %690  ;;  %v696_v1 = vpop.permute.xlu1 %695 }
 0x3b3   : > { %1217 = vrcp.f32 %v691_v58 }
 0x3b5   : > { %v1214_v59 = vpop.eup %1213 }
 0x3b6   : > { %v352_v60 = vmul.f32 %v1214_v59, %v1206_v45  ;;  %v521_v61 = vpop.permute.xlu0 %520 }
 0x3b8   : > { %1097 = vmatmul.mubr.msk.f32.vlgmr.msra.gmra.mrb[2].mxu1 %vm341_vm4, %v352_v60 }
 0x3b9   : > { %v1216_v62 = vpop.eup %1215  ;;  %1105 = vmatpush3.msra.mxu1 %v521_v61  ;;  %1106 = vmatprep.mubr.msk.f32.mxu1 %vm1356_vm1, %v1355_v0 }
 0x3ba   : > { %v518_v63 = vmul.f32 %v1216_v62, %v1208_v47  ;;  %1114 = vmatprep.subr.mxu1 %v1355_v0 }
 0x3bc   : > { %1107 = vmatmul.mubr.msk.f32.vlgmr.msra.gmra.mrb[4].mxu1 %vm341_vm4, %v518_v63 }
 0x3bd   : > { %v1218_v2 = vpop.eup %1217  ;;  %1115 = vmatpush3.msra.mxu1 %v696_v1  ;;  %1116 = vmatprep.mubr.msk.f32.mxu1 %vm1356_vm1, %v1355_v0 }
 0x3be   : > { %v693_v3 = vmul.f32 %v1218_v2, %v1210_v49  ;;  %1124 = vmatprep.subr.mxu1 %v1355_v0 }
 0x3c0   : > { %1117 = vmatmul.mubr.msk.f32.vlgmr.msra.gmra.mrb[6].mxu1 %vm341_vm4, %v693_v3 }
 0x3c1   : > { %1126 = vmatprep.mubr.msk.f32.mxu1 %vm1356_vm1, %v1355_v0 }
 0x3e3   : > { %v866_v4 = vpop.xlane.xlu1 %865 }
 0x3e4   : > { %1219 = vrcp.f32 %v866_v4 }
 0x3e7   : > { %v871_v5 = vpop.permute.xlu1 %870 }
 0x3e8   : > { %1125 = vmatpush3.msra.mxu1 %v871_v5 }
 0x3ee   : > { %v1220_v6 = vpop.eup %1219 }
 0x3ef   : > { %v868_v7 = vmul.f32 %v1220_v6, %v1212_v54 }
 0x3f1   : > { %1127 = vmatmul.mubr.msk.f32.vlgmr.msra.gmra.mrb[8].mxu1 %vm341_vm4, %v868_v7 }
 0x48b   : > { %v422_v8 = vpop.f32.mrb[2].mxu1 }
 0x48c   : > { %426 = vst.msk [vmem:[%s173_s3] sm:$0xff] %vm266_vm3, %v422_v8  ;;  %v1098_v9 = vpop.f32.mrb[3].mxu1 }
 0x48f   : > { %v592_v10 = vpop.f32.mrb[4].mxu1 }
 0x490   : > { %597 = vrot.lane.b32.xlu0 %v592_v10, %s1361_s23  ;;  %v1108_v11 = vpop.f32.mrb[5].mxu1 }
 0x493   : > { %v767_v0 = vpop.f32.mrb[6].mxu1 }
 0x494   : > { %772 = vrot.lane.b32.xlu1 %v767_v0, %s1359_s27  ;;  %v1118_v12 = vpop.f32.mrb[7].mxu1 }
 0x4c4   : > { %v942_v13 = vpop.f32.mrb[8].mxu1 }
 0x4c5   : > { %947 = vrot.lane.b32.xlu0 %v942_v13, %s1360_s22  ;;  %v1128_v14 = vpop.f32.mrb[9].mxu1 }
 0x502   : > { %v598_v15 = vpop.permute.xlu0 %597 }
 0x503   : > { %601 = vst.msk [vmem:[%s173_s3] sm:$0xff] %vm600_vm5, %v598_v15 }
 0x506   : > { %v773_v16 = vpop.permute.xlu1 %772 }
 0x507   : > { %776 = vst.msk [vmem:[%s173_s3] sm:$0xff] %vm775_vm6, %v773_v16 }
 0x537   : > { %v948_v17 = vpop.permute.xlu0 %947 }
 0x538   : > { %951 = vst.msk [vmem:[%s173_s3] sm:$0xff] %vm950_vm7, %v948_v17 }
 0x539   : > { %1292 = shalt.err (!%p1289_p7)
}
 0x53a   : > { %s1293_s20 = scalar_lea.hbm %s1600_s18, 128  ;;  %s1297_s17 = scalar_lea.hbm %s1646_s2, 256 }
 0x53b   : > { %p1294_p9 = scmp.ne.s32.totalorder %s1600_s18, %s1293_s20  ;;  %p1298_p0 = scmp.lt.u32.totalorder %s1600_s18, %s1646_s2 }
 0x53c   : > { %p1299_p11 = scmp.lt.u32.totalorder %s1297_s17, %s1293_s20  ;;  %p1301_p4 = scmp.lt.u32.totalorder %s1293_s20, %s1600_s18 }
 0x53d   : > { %p1295_p2 = pnand %p1294_p9, %p1471_p12 }
 0x53e   : > { %p1300_p1 = por %p1299_p11, %p1298_p0 }
 0x53f   : > { %p1296_p5 = pneg %p1295_p2 }
 0x540   : > { %p1302_p6 = por %p1301_p4, %p1300_p1 }
 0x542   : > { %p1303_p8 = pnand %p1302_p6, %p1296_p5 }
 0x544   : > { %1306 = shalt.err (!%p1303_p8)
}
 0x545   : > { %1143 = dma.vmem_to_hbm [thread:$0]  (%p1471_p12), %s1602_s5, 128, %s1600_s18, %s953_s24  }
 0x546 PF: > { %s978_s23 = sand.u32 1, %s1337_s9   ;;  %p1661_p10 = scmp.ne.s32.totalorder %s1651_s16, 0 }
 0x547   : > { %p1662_p13 = scmp.ge.s32.totalorder %s1349_s12, 2  ;;  %s979_s28 = scalar_lea.sflag [#allocation5], %s978_s23 }
 0x549   : > { %p1154_p3 = pnand %p1662_p13, %p1661_p10 }
 0x54b   : > { %1332 = dma.done.wait (!%p1154_p3), %s979_s28, 128  }
 0x54c   : > { %1334 = vsyncadd (!%p1154_p3), %s979_s28, 4294967168  ;;  %p16_p7 = scmp.ge.s32.totalorder %s1436_s21, 4   ;;  %s1663_s9 = smov %s1341_s10 }
 0x54d   : > { %s1664_s10 = smov %s1345_s11  ;;  %s1665_s11 = smov %s1467_s8 }
 0x54e   : > { %s1666_s12 = smov %s1436_s21  ;;  %18 = sbr.rel (!%p16_p7) target bundleno = 6 (0x6), region = 77 }
 0x555   :  { %984 = vsyncpa [#allocation4], 1 }
 0x556   :  { %986 = vsyncpa [#allocation4 + $0x1], 1 }
 0x557   :  { %987 = vsyncpa [#allocation7], 1 }
 0x558   :  { %988 = vsyncpa [#allocation5], 1 }
 0x559   :  { %990 = vsyncpa [#allocation5 + $0x1], 1 }

</bundles_post_ra>
